<compile_context>
chip_gen: v6e
topology: v6e:2x2x1
jax: 0.10.0
libtpu: 0.0.40
codegen_flags: <defaults>
</compile_context>

<pallas_src>
import functools

import jax
import jax.numpy as jnp
from jax.experimental import pallas as pl
from jax.experimental.pallas import tpu as pltpu

LANE = 128
SUBLANE = 8


def _round_up(n, m):
    return ((n + m - 1) // m) * m


def _device_kind():
    try:
        return jax.devices()[0].device_kind.lower()
    except Exception:
        return ""


def _leaky_relu(x, slope=0.2):
    # max(x, 0.2*x) == LeakyReLU_0.2(x) for slope in (0, 1); one vmul + one vmax.
    return jnp.maximum(x, slope * x)


def discriminator_kernel(x_ref,
                         w0_ref, b0_ref,
                         w1_ref, b1_ref,
                         w2_ref, b2_ref,
                         w3_ref, b3_ref,
                         o_ref,
                         *, bf16_epilogue):
    # Four MXU matmuls (bf16 operands, f32 accumulation) + bias + LeakyReLU fused.
    def layer(lhs, w_ref, b_ref):
        acc = jnp.dot(lhs, w_ref[...], preferred_element_type=jnp.float32) + b_ref[...]
        if bf16_epilogue:
            # v6e/v7x: packed-bf16 VALU epilogue (half the vreg traffic).
            return _leaky_relu(acc.astype(jnp.bfloat16))
        # v5e: no bf16 VPU -> LeakyReLU in f32, single cast at the end.
        return _leaky_relu(acc).astype(jnp.bfloat16)

    h = layer(x_ref[...], w0_ref, b0_ref)
    h = layer(h, w1_ref, b1_ref)
    h = layer(h, w2_ref, b2_ref)
    out = jnp.dot(h, w3_ref[...], preferred_element_type=jnp.float32) + b3_ref[...]
    o_ref[...] = out.astype(o_ref.dtype)


def _pad2(a, rows, cols, dtype):
    """Zero-pad a 2-D array to (rows, cols) and cast to dtype (exact: pads are 0)."""
    out = jnp.zeros((rows, cols), dtype)
    return out.at[: a.shape[0], : a.shape[1]].set(a.astype(dtype))


def pad_params(params):
    """One-time padding/casting of all weights & biases (hoisted out of the hot path)."""
    (w0, b0), (w1, b1), (w2, b2), (w3, b3) = params
    input_size, output_size = w0.shape[0], w3.shape[1]
    in_p = _round_up(input_size, LANE)
    d0_p = _round_up(w0.shape[1], LANE)
    d1_p = _round_up(w1.shape[1], LANE)
    d2_p = _round_up(w2.shape[1], LANE)
    out_p = _round_up(output_size, LANE)
    padded = (
        _pad2(w0, in_p, d0_p, jnp.bfloat16), _pad2(b0, 1, d0_p, jnp.float32),
        _pad2(w1, d0_p, d1_p, jnp.bfloat16), _pad2(b1, 1, d1_p, jnp.float32),
        _pad2(w2, d1_p, d2_p, jnp.bfloat16), _pad2(b2, 1, d2_p, jnp.float32),
        _pad2(w3, d2_p, out_p, jnp.bfloat16), _pad2(b3, 1, out_p, jnp.float32),
    )
    meta = (input_size, output_size, in_p, d0_p, d1_p, d2_p, out_p)
    return padded, meta


def _forward_impl(x, padded, *, meta, tile_b, single_buffer, device_kind):
    input_size, output_size, in_p, d0_p, d1_p, d2_p, out_p = meta
    w0p, b0p, w1p, b1p, w2p, b2p, w3p, b3p = padded

    x2d = x.reshape(-1, input_size)          # PyTorch x.view(-1, input_size)
    B = x2d.shape[0]
    out_dtype = x2d.dtype
    out_itemsize = jnp.dtype(out_dtype).itemsize

    is_v7 = "v7" in device_kind
    is_v5 = "v5" in device_kind
    bf16_epilogue = not is_v5

    # ---------- static VMEM budgeting (per TPU generation) ----------
    phys_vmem = (64 << 20) if is_v7 else (128 << 20)   # per-TC VMEM
    budget = phys_vmem - (16 << 20)                    # headroom for compiler scratch

    w_bufs = 1 if single_buffer else 2
    weight_bytes = (2 * (in_p * d0_p + d0_p * d1_p + d1_p * d2_p + d2_p * out_p)
                    + 4 * (d0_p + d1_p + d2_p + out_p)) * w_bufs
    max_w = max(d0_p, d1_p, d2_p)
    # double-buffered x/out tiles + f32 accumulator + bf16 activation per batch row
    per_row_bytes = 2 * (in_p * 2) + 2 * (out_p * out_itemsize) + max_w * (4 + 2)

    B8 = _round_up(B, SUBLANE)
    tile_vmem = (budget - weight_bytes - (2 << 20)) // per_row_bytes
    tile_vmem = max(SUBLANE, (tile_vmem // SUBLANE) * SUBLANE)

    tile_cap = tile_b
    if is_v7 and B8 > SUBLANE:
        # >= 2 grid steps so the "parallel" batch axis shards across both TensorCores.
        tile_cap = min(tile_cap, _round_up(pl.cdiv(B8, 2), SUBLANE))

    TILE_B = max(SUBLANE, min(tile_cap, tile_vmem, B8))
    TILE_B = (TILE_B // SUBLANE) * SUBLANE
    B_p = _round_up(B8, TILE_B)
    grid = (B_p // TILE_B,)

    footprint = weight_bytes + per_row_bytes * TILE_B + (2 << 20)
    vmem_limit = int(min(phys_vmem - (8 << 20), max(footprint, 16 << 20)))

    # ---------- input: skip padding when already lane/tile aligned ----------
    if B == B_p and input_size == in_p:
        xb = x2d.astype(jnp.bfloat16)
    else:
        xb = jnp.zeros((B_p, in_p), jnp.bfloat16)
        xb = xb.at[:B, :input_size].set(x2d.astype(jnp.bfloat16))

    def tiled(shape):
        return pl.BlockSpec(shape, lambda i: (i, 0))

    def resident(shape):
        if single_buffer:
            # Constant index_map -> never re-DMA'd; one VMEM buffer is enough.
            return pl.BlockSpec(shape, lambda i: (0, 0), pipeline_mode=pl.Buffered(1))
        return pl.BlockSpec(shape, lambda i: (0, 0))

    flops = 2 * B_p * (in_p * d0_p + d0_p * d1_p + d1_p * d2_p + d2_p * out_p)
    bytes_accessed = (
        xb.size * 2 + B_p * out_p * out_itemsize
        + 2 * (w0p.size + w1p.size + w2p.size + w3p.size)
        + 4 * (b0p.size + b1p.size + b2p.size + b3p.size)
    )

    out_padded = pl.pallas_call(
        functools.partial(discriminator_kernel, bf16_epilogue=bf16_epilogue),
        out_shape=jax.ShapeDtypeStruct((B_p, out_p), out_dtype),
        grid_spec=pltpu.PrefetchScalarGridSpec(
            num_scalar_prefetch=0,
            grid=grid,
            in_specs=[
                tiled((TILE_B, in_p)),
                resident(w0p.shape), resident(b0p.shape),
                resident(w1p.shape), resident(b1p.shape),
                resident(w2p.shape), resident(b2p.shape),
                resident(w3p.shape), resident(b3p.shape),
            ],
            out_specs=tiled((TILE_B, out_p)),
        ),
        compiler_params=pltpu.CompilerParams(
            dimension_semantics=("parallel",),
            vmem_limit_bytes=vmem_limit,
        ),
        cost_estimate=pl.CostEstimate(
            flops=flops, transcendentals=0, bytes_accessed=bytes_accessed
        ),
    )(xb, w0p, b0p, w1p, b1p, w2p, b2p, w3p, b3p)

    # Lane-dense (128-wide) store in-kernel; trim padding here.
    return out_padded[:B, :output_size]


def make_discriminator(params, *, tile_b=1024):
    """Pads/casts params once and returns a jitted forward(x) callable."""
    padded, meta = pad_params(params)
    kind = _device_kind()

    @functools.partial(jax.jit, static_argnames=("single_buffer",))
    def _fwd(x, padded_params, *, single_buffer):
        return _forward_impl(x, padded_params, meta=meta, tile_b=tile_b,
                             single_buffer=single_buffer, device_kind=kind)

    state = {"single_buffer": True}

    def forward(x):
        try:
            return _fwd(x, padded, single_buffer=state["single_buffer"])
        except Exception:
            # Fallback if pl.Buffered(1) is unsupported by the local JAX build:
            # rebuild with default (double-buffered) weight specs.
            if not state["single_buffer"]:
                raise
            state["single_buffer"] = False
            return _fwd(x, padded, single_buffer=False)

    return forward


def discriminator_forward(x, params, *, tile_b=1024):
    """One-shot convenience wrapper (pads params on every call; prefer make_discriminator)."""
    return make_discriminator(params, tile_b=tile_b)(x)


def init_params(key, input_size, hidden_dim, output_size):
    """Deterministic init mimicking PyTorch nn.Linear (uniform +-1/sqrt(fan_in)).

    Weights are stored as (in_features, out_features) — the transpose of
    PyTorch's (out, in) layout — so the kernel computes x @ W directly.
    Biases are stored as (1, out_features) for clean 2D broadcasting.
    """
    dims = [(input_size, hidden_dim * 4),
            (hidden_dim * 4, hidden_dim * 2),
            (hidden_dim * 2, hidden_dim),
            (hidden_dim, output_size)]
    params = []
    for (fan_in, fan_out) in dims:
        key, kw, kb = jax.random.split(key, 3)
        bound = 1.0 / (fan_in ** 0.5)
        w = jax.random.uniform(kw, (fan_in, fan_out), jnp.float32, -bound, bound)
        b = jax.random.uniform(kb, (1, fan_out), jnp.float32, -bound, bound)
        params.append((w, b))
    return params


def reference_forward(x, params):
    (w0, b0), (w1, b1), (w2, b2), (w3, b3) = params
    h = x.reshape(-1, w0.shape[0]).astype(jnp.float32)
    for (w, b) in ((w0, b0), (w1, b1), (w2, b2)):
        z = h @ w + b
        h = jnp.maximum(z, 0.2 * z)
    return h @ w3 + b3


if __name__ == "__main__":
    # Small, module-consistent shapes: e.g. 8x8 single-channel images.
    batch = 8
    input_size = 64        # = 1 * 8 * 8 after view(-1, input_size)
    hidden_dim = 32
    output_size = 1

    key = jax.random.PRNGKey(0)
    key, kx = jax.random.split(key)
    x = jax.random.normal(kx, (batch, 1, 8, 8), jnp.float32)

    params = init_params(key, input_size, hidden_dim, output_size)

    disc = make_discriminator(params, tile_b=1024)
    out = jax.block_until_ready(disc(x))

    ref = reference_forward(x, params)
    assert out.shape == (batch, output_size), out.shape
    # bf16 MXU operands / bf16 inter-layer activations vs f32 reference -> relaxed tolerance.
    assert jnp.allclose(out, ref, atol=2e-2, rtol=2e-2), "mismatch vs JAX reference"

    print("KERNEL_OK")
</pallas_src>

<mosaic_0001>
module attributes {stable_mosaic.version = 11 : i64} {
  func.func @discriminator_kernel(%arg0: i32, %arg1: memref<8x128xbf16, #tpu.memory_space<vmem>>, %arg2: memref<128x128xbf16, #tpu.memory_space<vmem>>, %arg3: memref<1x128xf32, #tpu.memory_space<vmem>>, %arg4: memref<128x128xbf16, #tpu.memory_space<vmem>>, %arg5: memref<1x128xf32, #tpu.memory_space<vmem>>, %arg6: memref<128x128xbf16, #tpu.memory_space<vmem>>, %arg7: memref<1x128xf32, #tpu.memory_space<vmem>>, %arg8: memref<128x128xbf16, #tpu.memory_space<vmem>>, %arg9: memref<1x128xf32, #tpu.memory_space<vmem>>, %arg10: memref<8x128xf32, #tpu.memory_space<vmem>>) attributes {dimension_semantics = [#tpu.dimension_semantics<parallel>], iteration_bounds = array<i64: 1>, scalar_prefetch = 0 : i64, scratch_operands = 0 : i64, tpu.core_type = #tpu.core_type<tc>, window_params = [{transform_indices = @transform_0, window_bounds = array<i64: 8, 128>}, {pipeline_mode = #tpu.pipeline_mode<synchronous>, transform_indices = @transform_1, window_bounds = array<i64: 128, 128>}, {pipeline_mode = #tpu.pipeline_mode<synchronous>, transform_indices = @transform_2, window_bounds = array<i64: 1, 128>}, {pipeline_mode = #tpu.pipeline_mode<synchronous>, transform_indices = @transform_3, window_bounds = array<i64: 128, 128>}, {pipeline_mode = #tpu.pipeline_mode<synchronous>, transform_indices = @transform_4, window_bounds = array<i64: 1, 128>}, {pipeline_mode = #tpu.pipeline_mode<synchronous>, transform_indices = @transform_5, window_bounds = array<i64: 128, 128>}, {pipeline_mode = #tpu.pipeline_mode<synchronous>, transform_indices = @transform_6, window_bounds = array<i64: 1, 128>}, {pipeline_mode = #tpu.pipeline_mode<synchronous>, transform_indices = @transform_7, window_bounds = array<i64: 128, 128>}, {pipeline_mode = #tpu.pipeline_mode<synchronous>, transform_indices = @transform_8, window_bounds = array<i64: 1, 128>}, {transform_indices = @transform_9, window_bounds = array<i64: 8, 128>}]} {
    %c0 = arith.constant 0 : index
    %c0_0 = arith.constant 0 : index
    %0 = vector.load %arg1[%c0, %c0_0] : memref<8x128xbf16, #tpu.memory_space<vmem>>, vector<8x128xbf16>
    %c0_1 = arith.constant 0 : index
    %c0_2 = arith.constant 0 : index
    %1 = vector.load %arg2[%c0_1, %c0_2] : memref<128x128xbf16, #tpu.memory_space<vmem>>, vector<128x128xbf16>
    %cst = arith.constant dense<0.000000e+00> : vector<8x128xf32>
    %2 = tpu.matmul %0, %1, %cst {dimension_numbers = #tpu.dot_dimension_numbers<[1], [0], [0], [1], [0, 0, 1, 1], [], []>} : vector<8x128xbf16>, vector<128x128xbf16>, vector<8x128xf32> -> vector<8x128xf32>
    %c0_3 = arith.constant 0 : index
    %c0_4 = arith.constant 0 : index
    %3 = vector.load %arg3[%c0_3, %c0_4] : memref<1x128xf32, #tpu.memory_space<vmem>>, vector<1x128xf32>
    %4 = vector.broadcast %3 : vector<1x128xf32> to vector<8x128xf32>
    %5 = arith.addf %2, %4 : vector<8x128xf32>
    %6 = arith.truncf %5 : vector<8x128xf32> to vector<8x128xbf16>
    %cst_5 = arith.constant 2.001950e-01 : bf16
    %7 = vector.broadcast %cst_5 : bf16 to vector<8x128xbf16>
    %8 = arith.mulf %7, %6 : vector<8x128xbf16>
    %9 = arith.maximumf %6, %8 : vector<8x128xbf16>
    %c0_6 = arith.constant 0 : index
    %c0_7 = arith.constant 0 : index
    %10 = vector.load %arg4[%c0_6, %c0_7] : memref<128x128xbf16, #tpu.memory_space<vmem>>, vector<128x128xbf16>
    %cst_8 = arith.constant dense<0.000000e+00> : vector<8x128xf32>
    %11 = tpu.matmul %9, %10, %cst_8 {dimension_numbers = #tpu.dot_dimension_numbers<[1], [0], [0], [1], [0, 0, 1, 1], [], []>} : vector<8x128xbf16>, vector<128x128xbf16>, vector<8x128xf32> -> vector<8x128xf32>
    %c0_9 = arith.constant 0 : index
    %c0_10 = arith.constant 0 : index
    %12 = vector.load %arg5[%c0_9, %c0_10] : memref<1x128xf32, #tpu.memory_space<vmem>>, vector<1x128xf32>
    %13 = vector.broadcast %12 : vector<1x128xf32> to vector<8x128xf32>
    %14 = arith.addf %11, %13 : vector<8x128xf32>
    %15 = arith.truncf %14 : vector<8x128xf32> to vector<8x128xbf16>
    %cst_11 = arith.constant 2.001950e-01 : bf16
    %16 = vector.broadcast %cst_11 : bf16 to vector<8x128xbf16>
    %17 = arith.mulf %16, %15 : vector<8x128xbf16>
    %18 = arith.maximumf %15, %17 : vector<8x128xbf16>
    %c0_12 = arith.constant 0 : index
    %c0_13 = arith.constant 0 : index
    %19 = vector.load %arg6[%c0_12, %c0_13] : memref<128x128xbf16, #tpu.memory_space<vmem>>, vector<128x128xbf16>
    %cst_14 = arith.constant dense<0.000000e+00> : vector<8x128xf32>
    %20 = tpu.matmul %18, %19, %cst_14 {dimension_numbers = #tpu.dot_dimension_numbers<[1], [0], [0], [1], [0, 0, 1, 1], [], []>} : vector<8x128xbf16>, vector<128x128xbf16>, vector<8x128xf32> -> vector<8x128xf32>
    %c0_15 = arith.constant 0 : index
    %c0_16 = arith.constant 0 : index
    %21 = vector.load %arg7[%c0_15, %c0_16] : memref<1x128xf32, #tpu.memory_space<vmem>>, vector<1x128xf32>
    %22 = vector.broadcast %21 : vector<1x128xf32> to vector<8x128xf32>
    %23 = arith.addf %20, %22 : vector<8x128xf32>
    %24 = arith.truncf %23 : vector<8x128xf32> to vector<8x128xbf16>
    %cst_17 = arith.constant 2.001950e-01 : bf16
    %25 = vector.broadcast %cst_17 : bf16 to vector<8x128xbf16>
    %26 = arith.mulf %25, %24 : vector<8x128xbf16>
    %27 = arith.maximumf %24, %26 : vector<8x128xbf16>
    %c0_18 = arith.constant 0 : index
    %c0_19 = arith.constant 0 : index
    %28 = vector.load %arg8[%c0_18, %c0_19] : memref<128x128xbf16, #tpu.memory_space<vmem>>, vector<128x128xbf16>
    %cst_20 = arith.constant dense<0.000000e+00> : vector<8x128xf32>
    %29 = tpu.matmul %27, %28, %cst_20 {dimension_numbers = #tpu.dot_dimension_numbers<[1], [0], [0], [1], [0, 0, 1, 1], [], []>} : vector<8x128xbf16>, vector<128x128xbf16>, vector<8x128xf32> -> vector<8x128xf32>
    %c0_21 = arith.constant 0 : index
    %c0_22 = arith.constant 0 : index
    %30 = vector.load %arg9[%c0_21, %c0_22] : memref<1x128xf32, #tpu.memory_space<vmem>>, vector<1x128xf32>
    %31 = vector.broadcast %30 : vector<1x128xf32> to vector<8x128xf32>
    %32 = arith.addf %29, %31 : vector<8x128xf32>
    %c0_23 = arith.constant 0 : index
    %c0_24 = arith.constant 0 : index
    %33 = vector.load %arg10[%c0_23, %c0_24] : memref<8x128xf32, #tpu.memory_space<vmem>>, vector<8x128xf32>
    tpu.vector_store %arg10[%c0_23, %c0_24], %32 {strides = array<i32>} : memref<8x128xf32, #tpu.memory_space<vmem>>, vector<8x128xf32>,
    return
  }
  func.func @transform_0(%arg0: i32) -> (i32, i32) {
    %c0_i32 = arith.constant 0 : i32
    %c0_i32_0 = arith.constant 0 : i32
    return %arg0, %c0_i32 : i32, i32
  }
  func.func @transform_1(%arg0: i32) -> (i32, i32) {
    %c0_i32 = arith.constant 0 : i32
    %c0_i32_0 = arith.constant 0 : i32
    %c0_i32_1 = arith.constant 0 : i32
    return %c0_i32, %c0_i32_0 : i32, i32
  }
  func.func @transform_2(%arg0: i32) -> (i32, i32) {
    %c0_i32 = arith.constant 0 : i32
    %c0_i32_0 = arith.constant 0 : i32
    %c0_i32_1 = arith.constant 0 : i32
    return %c0_i32, %c0_i32_0 : i32, i32
  }
  func.func @transform_3(%arg0: i32) -> (i32, i32) {
    %c0_i32 = arith.constant 0 : i32
    %c0_i32_0 = arith.constant 0 : i32
    %c0_i32_1 = arith.constant 0 : i32
    return %c0_i32, %c0_i32_0 : i32, i32
  }
  func.func @transform_4(%arg0: i32) -> (i32, i32) {
    %c0_i32 = arith.constant 0 : i32
    %c0_i32_0 = arith.constant 0 : i32
    %c0_i32_1 = arith.constant 0 : i32
    return %c0_i32, %c0_i32_0 : i32, i32
  }
  func.func @transform_5(%arg0: i32) -> (i32, i32) {
    %c0_i32 = arith.constant 0 : i32
    %c0_i32_0 = arith.constant 0 : i32
    %c0_i32_1 = arith.constant 0 : i32
    return %c0_i32, %c0_i32_0 : i32, i32
  }
  func.func @transform_6(%arg0: i32) -> (i32, i32) {
    %c0_i32 = arith.constant 0 : i32
    %c0_i32_0 = arith.constant 0 : i32
    %c0_i32_1 = arith.constant 0 : i32
    return %c0_i32, %c0_i32_0 : i32, i32
  }
  func.func @transform_7(%arg0: i32) -> (i32, i32) {
    %c0_i32 = arith.constant 0 : i32
    %c0_i32_0 = arith.constant 0 : i32
    %c0_i32_1 = arith.constant 0 : i32
    return %c0_i32, %c0_i32_0 : i32, i32
  }
  func.func @transform_8(%arg0: i32) -> (i32, i32) {
    %c0_i32 = arith.constant 0 : i32
    %c0_i32_0 = arith.constant 0 : i32
    %c0_i32_1 = arith.constant 0 : i32
    return %c0_i32, %c0_i32_0 : i32, i32
  }
  func.func @transform_9(%arg0: i32) -> (i32, i32) {
    %c0_i32 = arith.constant 0 : i32
    %c0_i32_0 = arith.constant 0 : i32
    return %arg0, %c0_i32 : i32, i32
  }
}

module attributes {stable_mosaic.version = 11 : i64} {
  func.func @discriminator_kernel(%arg0: i32, %arg1: memref<8x128xbf16, #tpu.memory_space<vmem>>, %arg2: memref<128x128xbf16, #tpu.memory_space<vmem>>, %arg3: memref<1x128xf32, #tpu.memory_space<vmem>>, %arg4: memref<128x128xbf16, #tpu.memory_space<vmem>>, %arg5: memref<1x128xf32, #tpu.memory_space<vmem>>, %arg6: memref<128x128xbf16, #tpu.memory_space<vmem>>, %arg7: memref<1x128xf32, #tpu.memory_space<vmem>>, %arg8: memref<128x128xbf16, #tpu.memory_space<vmem>>, %arg9: memref<1x128xf32, #tpu.memory_space<vmem>>, %arg10: memref<8x128xf32, #tpu.memory_space<vmem>>) attributes {dimension_semantics = [#tpu.dimension_semantics<parallel>], iteration_bounds = array<i64: 1>, scalar_prefetch = 0 : i64, scratch_operands = 0 : i64, tpu.core_type = #tpu.core_type<tc>, window_params = [{transform_indices = @transform_0, window_bounds = array<i64: 8, 128>}, {pipeline_mode = #tpu.pipeline_mode<synchronous>, transform_indices = @transform_1, window_bounds = array<i64: 128, 128>}, {pipeline_mode = #tpu.pipeline_mode<synchronous>, transform_indices = @transform_2, window_bounds = array<i64: 1, 128>}, {pipeline_mode = #tpu.pipeline_mode<synchronous>, transform_indices = @transform_3, window_bounds = array<i64: 128, 128>}, {pipeline_mode = #tpu.pipeline_mode<synchronous>, transform_indices = @transform_4, window_bounds = array<i64: 1, 128>}, {pipeline_mode = #tpu.pipeline_mode<synchronous>, transform_indices = @transform_5, window_bounds = array<i64: 128, 128>}, {pipeline_mode = #tpu.pipeline_mode<synchronous>, transform_indices = @transform_6, window_bounds = array<i64: 1, 128>}, {pipeline_mode = #tpu.pipeline_mode<synchronous>, transform_indices = @transform_7, window_bounds = array<i64: 128, 128>}, {pipeline_mode = #tpu.pipeline_mode<synchronous>, transform_indices = @transform_8, window_bounds = array<i64: 1, 128>}, {transform_indices = @transform_9, window_bounds = array<i64: 8, 128>}]} {
    %c0 = arith.constant 0 : index
    %c0_0 = arith.constant 0 : index
    %0 = vector.load %arg1[%c0, %c0_0] : memref<8x128xbf16, #tpu.memory_space<vmem>>, vector<8x128xbf16>
    %c0_1 = arith.constant 0 : index
    %c0_2 = arith.constant 0 : index
    %1 = vector.load %arg2[%c0_1, %c0_2] : memref<128x128xbf16, #tpu.memory_space<vmem>>, vector<128x128xbf16>
    %cst = arith.constant dense<0.000000e+00> : vector<8x128xf32>
    %2 = tpu.matmul %0, %1, %cst {dimension_numbers = #tpu.dot_dimension_numbers<[1], [0], [0], [1], [0, 0, 1, 1], [], []>} : vector<8x128xbf16>, vector<128x128xbf16>, vector<8x128xf32> -> vector<8x128xf32>
    %c0_3 = arith.constant 0 : index
    %c0_4 = arith.constant 0 : index
    %3 = vector.load %arg3[%c0_3, %c0_4] : memref<1x128xf32, #tpu.memory_space<vmem>>, vector<1x128xf32>
    %4 = vector.broadcast %3 : vector<1x128xf32> to vector<8x128xf32>
    %5 = arith.addf %2, %4 : vector<8x128xf32>
    %6 = arith.truncf %5 : vector<8x128xf32> to vector<8x128xbf16>
    %cst_5 = arith.constant 2.001950e-01 : bf16
    %7 = vector.broadcast %cst_5 : bf16 to vector<8x128xbf16>
    %8 = arith.mulf %7, %6 : vector<8x128xbf16>
    %9 = arith.maximumf %6, %8 : vector<8x128xbf16>
    %c0_6 = arith.constant 0 : index
    %c0_7 = arith.constant 0 : index
    %10 = vector.load %arg4[%c0_6, %c0_7] : memref<128x128xbf16, #tpu.memory_space<vmem>>, vector<128x128xbf16>
    %cst_8 = arith.constant dense<0.000000e+00> : vector<8x128xf32>
    %11 = tpu.matmul %9, %10, %cst_8 {dimension_numbers = #tpu.dot_dimension_numbers<[1], [0], [0], [1], [0, 0, 1, 1], [], []>} : vector<8x128xbf16>, vector<128x128xbf16>, vector<8x128xf32> -> vector<8x128xf32>
    %c0_9 = arith.constant 0 : index
    %c0_10 = arith.constant 0 : index
    %12 = vector.load %arg5[%c0_9, %c0_10] : memref<1x128xf32, #tpu.memory_space<vmem>>, vector<1x128xf32>
    %13 = vector.broadcast %12 : vector<1x128xf32> to vector<8x128xf32>
    %14 = arith.addf %11, %13 : vector<8x128xf32>
    %15 = arith.truncf %14 : vector<8x128xf32> to vector<8x128xbf16>
    %cst_11 = arith.constant 2.001950e-01 : bf16
    %16 = vector.broadcast %cst_11 : bf16 to vector<8x128xbf16>
    %17 = arith.mulf %16, %15 : vector<8x128xbf16>
    %18 = arith.maximumf %15, %17 : vector<8x128xbf16>
    %c0_12 = arith.constant 0 : index
    %c0_13 = arith.constant 0 : index
    %19 = vector.load %arg6[%c0_12, %c0_13] : memref<128x128xbf16, #tpu.memory_space<vmem>>, vector<128x128xbf16>
    %cst_14 = arith.constant dense<0.000000e+00> : vector<8x128xf32>
    %20 = tpu.matmul %18, %19, %cst_14 {dimension_numbers = #tpu.dot_dimension_numbers<[1], [0], [0], [1], [0, 0, 1, 1], [], []>} : vector<8x128xbf16>, vector<128x128xbf16>, vector<8x128xf32> -> vector<8x128xf32>
    %c0_15 = arith.constant 0 : index
    %c0_16 = arith.constant 0 : index
    %21 = vector.load %arg7[%c0_15, %c0_16] : memref<1x128xf32, #tpu.memory_space<vmem>>, vector<1x128xf32>
    %22 = vector.broadcast %21 : vector<1x128xf32> to vector<8x128xf32>
    %23 = arith.addf %20, %22 : vector<8x128xf32>
    %24 = arith.truncf %23 : vector<8x128xf32> to vector<8x128xbf16>
    %cst_17 = arith.constant 2.001950e-01 : bf16
    %25 = vector.broadcast %cst_17 : bf16 to vector<8x128xbf16>
    %26 = arith.mulf %25, %24 : vector<8x128xbf16>
    %27 = arith.maximumf %24, %26 : vector<8x128xbf16>
    %c0_18 = arith.constant 0 : index
    %c0_19 = arith.constant 0 : index
    %28 = vector.load %arg8[%c0_18, %c0_19] : memref<128x128xbf16, #tpu.memory_space<vmem>>, vector<128x128xbf16>
    %cst_20 = arith.constant dense<0.000000e+00> : vector<8x128xf32>
    %29 = tpu.matmul %27, %28, %cst_20 {dimension_numbers = #tpu.dot_dimension_numbers<[1], [0], [0], [1], [0, 0, 1, 1], [], []>} : vector<8x128xbf16>, vector<128x128xbf16>, vector<8x128xf32> -> vector<8x128xf32>
    %c0_21 = arith.constant 0 : index
    %c0_22 = arith.constant 0 : index
    %30 = vector.load %arg9[%c0_21, %c0_22] : memref<1x128xf32, #tpu.memory_space<vmem>>, vector<1x128xf32>
    %31 = vector.broadcast %30 : vector<1x128xf32> to vector<8x128xf32>
    %32 = arith.addf %29, %31 : vector<8x128xf32>
    %c0_23 = arith.constant 0 : index
    %c0_24 = arith.constant 0 : index
    %33 = vector.load %arg10[%c0_23, %c0_24] : memref<8x128xf32, #tpu.memory_space<vmem>>, vector<8x128xf32>
    tpu.vector_store %arg10[%c0_23, %c0_24], %32 {strides = array<i32>} : memref<8x128xf32, #tpu.memory_space<vmem>>, vector<8x128xf32>,
    return
  }
  func.func @transform_0(%arg0: i32) -> (i32, i32) {
    %c0_i32 = arith.constant 0 : i32
    %c0_i32_0 = arith.constant 0 : i32
    return %arg0, %c0_i32 : i32, i32
  }
  func.func @transform_1(%arg0: i32) -> (i32, i32) {
    %c0_i32 = arith.constant 0 : i32
    %c0_i32_0 = arith.constant 0 : i32
    %c0_i32_1 = arith.constant 0 : i32
    return %c0_i32, %c0_i32_0 : i32, i32
  }
  func.func @transform_2(%arg0: i32) -> (i32, i32) {
    %c0_i32 = arith.constant 0 : i32
    %c0_i32_0 = arith.constant 0 : i32
    %c0_i32_1 = arith.constant 0 : i32
    return %c0_i32, %c0_i32_0 : i32, i32
  }
  func.func @transform_3(%arg0: i32) -> (i32, i32) {
    %c0_i32 = arith.constant 0 : i32
    %c0_i32_0 = arith.constant 0 : i32
    %c0_i32_1 = arith.constant 0 : i32
    return %c0_i32, %c0_i32_0 : i32, i32
  }
  func.func @transform_4(%arg0: i32) -> (i32, i32) {
    %c0_i32 = arith.constant 0 : i32
    %c0_i32_0 = arith.constant 0 : i32
    %c0_i32_1 = arith.constant 0 : i32
    return %c0_i32, %c0_i32_0 : i32, i32
  }
  func.func @transform_5(%arg0: i32) -> (i32, i32) {
    %c0_i32 = arith.constant 0 : i32
    %c0_i32_0 = arith.constant 0 : i32
    %c0_i32_1 = arith.constant 0 : i32
    return %c0_i32, %c0_i32_0 : i32, i32
  }
  func.func @transform_6(%arg0: i32) -> (i32, i32) {
    %c0_i32 = arith.constant 0 : i32
    %c0_i32_0 = arith.constant 0 : i32
    %c0_i32_1 = arith.constant 0 : i32
    return %c0_i32, %c0_i32_0 : i32, i32
  }
  func.func @transform_7(%arg0: i32) -> (i32, i32) {
    %c0_i32 = arith.constant 0 : i32
    %c0_i32_0 = arith.constant 0 : i32
    %c0_i32_1 = arith.constant 0 : i32
    return %c0_i32, %c0_i32_0 : i32, i32
  }
  func.func @transform_8(%arg0: i32) -> (i32, i32) {
    %c0_i32 = arith.constant 0 : i32
    %c0_i32_0 = arith.constant 0 : i32
    %c0_i32_1 = arith.constant 0 : i32
    return %c0_i32, %c0_i32_0 : i32, i32
  }
  func.func @transform_9(%arg0: i32) -> (i32, i32) {
    %c0_i32 = arith.constant 0 : i32
    %c0_i32_0 = arith.constant 0 : i32
    return %arg0, %c0_i32 : i32, i32
  }
}

</mosaic_0001>

<bundles_post_ra>
// kernel: _fwd.1
= control target key start
LH: loop header
LB: loop body
LE: loop exit
PB: predicated region body
PF: predicated region fallthrough
CT: control target
= control target key end

     0   :  { %14 = vsyncpa [#allocation3], 0  ;;  %s925_s0 = inlined_call_operand.vmem [shape: bf16[8,128], index: 0, kind: input, shape index: {}]   ;;  %s926_s1 = inlined_call_operand.vmem [shape: bf16[128,128], index: 1, kind: input, shape index: {}]   ;;  %s927_s2 = inlined_call_operand.vmem [shape: f32[1,128], index: 2, kind: input, shape index: {}]   ;;  %s928_s3 = inlined_call_operand.vmem [shape: bf16[128,128], index: 3, kind: input, shape index: {}]   ;;  %s929_s4 = inlined_call_operand.vmem [shape: f32[1,128], index: 4, kind: input, shape index: {}]   ;;  %s930_s5 = inlined_call_operand.hbm [shape: bf16[128,128], index: 5, kind: input, shape index: {}]   ;;  %s931_s6 = inlined_call_operand.vmem [shape: f32[1,128], index: 6, kind: input, shape index: {}]   ;;  %s932_s7 = inlined_call_operand.hbm [shape: bf16[128,128], index: 7, kind: input, shape index: {}]   ;;  %s933_s8 = inlined_call_operand.vmem [shape: f32[1,128], index: 8, kind: input, shape index: {}]   ;;  %s934_s9 = inlined_call_operand.vmem [shape: f32[8,128], index: 9, kind: output, shape index: {}]  }
   0x1   :  { %15 = vsyncpa [#allocation5], 0  ;;  %s757_s30 = smov [#allocation2]  }
   0x2   :  { %s31_s10 = sshll.u32 %s757_s30, 4  ;;  %s32_s10 = int_to_ptr.vmem [resolvable:$true] %s31_s10 }
   0x3   :  { %s721_s11 = scalar_lea.vmem %s32_s10, 1024  ;;  %p726_p1 = scmp.lt.s32.totalorder %s32_s10, %s32_s10 }
   0x4   :  { %p722_p0 = scmp.ne.s32.totalorder %s32_s10, %s721_s11  ;;  %p727_p2 = scmp.lt.s32.totalorder %s721_s11, %s721_s11 }
   0x6   :  { %p728_p3 = por %p727_p2, %p726_p1 }
   0x8   :  { %p729_p4 = pnand %p728_p3, %p722_p0 }
   0xa   :  { %732 = shalt.err (!%p729_p4)
}
   0xb   :  { %s758_s12 = smov 64   ;;  %s759_s13 = smov 4  }
   0xc   :  { %37 = dma.hbm_to_vmem [thread:$0]  %s930_s5, 1024, %s32_s10, [#allocation3], %s758_s12, %s758_s12, %s759_s13  }
   0xd   :  { %s760_s16 = smov [#allocation4]  }
   0xe   :  { %s45_s17 = sshll.u32 %s760_s16, 4  ;;  %s46_s17 = int_to_ptr.vmem [resolvable:$true] %s45_s17 }
   0xf   :  { %s741_s18 = scalar_lea.vmem %s46_s17, 1024  ;;  %p746_p6 = scmp.lt.s32.totalorder %s46_s17, %s46_s17 }
  0x10   :  { %p742_p5 = scmp.ne.s32.totalorder %s46_s17, %s741_s18  ;;  %p747_p7 = scmp.lt.s32.totalorder %s741_s18, %s741_s18 }
  0x12   :  { %p748_p8 = por %p747_p7, %p746_p6 }
  0x14   :  { %p749_p9 = pnand %p748_p8, %p742_p5 }
  0x16   :  { %752 = shalt.err (!%p749_p9)
}
  0x17   :  { %51 = dma.hbm_to_vmem [thread:$0]  %s932_s7, 1024, %s46_s17, [#allocation5], %s758_s12, %s758_s12, %s759_s13  }
  0x18   :  { %753 = dma.done.wait [#allocation3], 1024  }
  0x19   :  { %754 = vsyncadd [#allocation3], 4294966272 }
  0x1a   :  { %755 = dma.done.wait [#allocation5], 1024  }
  0x1b   :  { %756 = vsyncadd [#allocation5], 4294966272  ;;  %v761_v0 = vmov 0.0   ;;  %vm762_vm0 = vmmov 0   ;;  %v681_v1 = vld [vmem:[%s926_s1 + $0x38] sm:$0xff]   ;;  %v682_v2 = vld [vmem:[%s926_s1 + $0x30] sm:$0xff]  }
  0x1c   :  { %595 = vmatprep.subr.bf16.mxu0 %v761_v0  ;;  %611 = vmatprep.mubr.msk.bf16.mxu0 %vm762_vm0, %v761_v0  ;;  %v683_v3 = vld [vmem:[%s926_s1 + $0x28] sm:$0xff]   ;;  %v689_v4 = vld [vmem:[%s928_s3 + $0x38] sm:$0xff]   ;;  %v684_v5 = vld [vmem:[%s926_s1 + $0x20] sm:$0xff]  }
  0x1d   :  { %615 = vmatprep.subr.bf16.mxu1 %v761_v0  ;;  %631 = vmatprep.mubr.msk.bf16.mxu1 %vm762_vm0, %v761_v0  ;;  %v690_v6 = vld [vmem:[%s928_s3 + $0x30] sm:$0xff]   ;;  %v685_v7 = vld [vmem:[%s926_s1 + $0x18] sm:$0xff]   ;;  %v691_v8 = vld [vmem:[%s928_s3 + $0x28] sm:$0xff]  }
  0x1e   :  { %596 = vmatpush3.bf16.msra.mxu0 %v681_v1  ;;  %616 = vmatpush3.bf16.msra.mxu1 %v689_v4  ;;  %v686_v9 = vld [vmem:[%s926_s1 + $0x10] sm:$0xff]   ;;  %v692_v10 = vld [vmem:[%s928_s3 + $0x20] sm:$0xff]   ;;  %v687_v11 = vld [vmem:[%s926_s1 + $0x8] sm:$0xff]  }
  0x1f   :  { %597 = vmatprep.subr.bf16.mxu0 %v761_v0  ;;  %617 = vmatprep.subr.bf16.mxu1 %v761_v0  ;;  %v693_v12 = vld [vmem:[%s928_s3 + $0x18] sm:$0xff]   ;;  %v688_v13 = vld [vmem:[%s926_s1] sm:$0xff]   ;;  %v694_v14 = vld [vmem:[%s928_s3 + $0x10] sm:$0xff]  }
  0x20   :  { %v62_v15 = vld [vmem:[%s925_s0] sm:$0xf]  ;;  %v695_v16 = vld [vmem:[%s928_s3 + $0x8] sm:$0xff]   ;;  %v697_v18 = vld [vmem:[#allocation2 + $0x38] sm:$0xff]  }
  0x21   :  { %v696_v17 = vld [vmem:[%s928_s3] sm:$0xff]   ;;  %v698_v19 = vld [vmem:[#allocation2 + $0x30] sm:$0xff]   ;;  %v699_v20 = vld [vmem:[#allocation2 + $0x28] sm:$0xff]  }
  0x22   :  { %598 = vmatpush3.bf16.msra.mxu0 %v682_v2  ;;  %618 = vmatpush3.bf16.msra.mxu1 %v690_v6  ;;  %v700_v21 = vld [vmem:[#allocation2 + $0x20] sm:$0xff]   ;;  %v701_v22 = vld [vmem:[#allocation2 + $0x18] sm:$0xff]   ;;  %v702_v23 = vld [vmem:[#allocation2 + $0x10] sm:$0xff]  }
  0x23   :  { %599 = vmatprep.subr.bf16.mxu0 %v761_v0  ;;  %619 = vmatprep.subr.bf16.mxu1 %v761_v0  ;;  %v523_v24 = vld [vmem:[%s927_s2] ss:$0 sm:$0xff]  ;;  %v703_v33 = vld [vmem:[#allocation2 + $0x8] sm:$0xff]   ;;  %v705_v35 = vld [vmem:[#allocation4 + $0x38] sm:$0xff]  }
  0x24   :  { %v704_v34 = vld [vmem:[#allocation2] sm:$0xff]   ;;  %v706_v36 = vld [vmem:[#allocation4 + $0x30] sm:$0xff]   ;;  %v707_v37 = vld [vmem:[#allocation4 + $0x28] sm:$0xff]  }
  0x25   :  { %v708_v38 = vld [vmem:[#allocation4 + $0x20] sm:$0xff]   ;;  %v709_v39 = vld [vmem:[#allocation4 + $0x18] sm:$0xff]   ;;  %v710_v40 = vld [vmem:[#allocation4 + $0x10] sm:$0xff]  }
  0x26   :  { %600 = vmatpush3.bf16.msra.mxu0 %v683_v3  ;;  %620 = vmatpush3.bf16.msra.mxu1 %v691_v8  ;;  %v532_v41 = vld [vmem:[%s929_s4] ss:$0 sm:$0xff]  ;;  %v711_v50 = vld [vmem:[#allocation4 + $0x8] sm:$0xff]  }
  0x27   :  { %601 = vmatprep.subr.bf16.mxu0 %v761_v0  ;;  %621 = vmatprep.subr.bf16.mxu1 %v761_v0  ;;  %v712_v51 = vld [vmem:[#allocation4] sm:$0xff]  }
  0x28   :  { %v541_v52 = vld [vmem:[%s931_s6] ss:$0 sm:$0xff] }
  0x29   :  { %v550_v61 = vld [vmem:[%s933_s8] ss:$0 sm:$0xff] }
  0x2a   :  { %602 = vmatpush3.bf16.msra.mxu0 %v684_v5  ;;  %622 = vmatpush3.bf16.msra.mxu1 %v692_v10 }
  0x2b   :  { %603 = vmatprep.subr.bf16.mxu0 %v761_v0  ;;  %623 = vmatprep.subr.bf16.mxu1 %v761_v0 }
  0x2e   :  { %604 = vmatpush3.bf16.msra.mxu0 %v685_v7  ;;  %624 = vmatpush3.bf16.msra.mxu1 %v693_v12 }
  0x2f   :  { %605 = vmatprep.subr.bf16.mxu0 %v761_v0  ;;  %625 = vmatprep.subr.bf16.mxu1 %v761_v0 }
  0x32   :  { %606 = vmatpush3.bf16.msra.mxu0 %v686_v9  ;;  %626 = vmatpush3.bf16.msra.mxu1 %v694_v14 }
  0x33   :  { %607 = vmatprep.subr.bf16.mxu0 %v761_v0  ;;  %627 = vmatprep.subr.bf16.mxu1 %v761_v0 }
  0x36   :  { %608 = vmatpush3.bf16.msra.mxu0 %v687_v11  ;;  %628 = vmatpush3.bf16.msra.mxu1 %v695_v16 }
  0x37   :  { %609 = vmatprep.subr.bf16.mxu0 %v761_v0  ;;  %629 = vmatprep.subr.bf16.mxu1 %v761_v0 }
  0x3a   :  { %610 = vmatpush3.bf16.msra.mxu0 %v688_v13  ;;  %630 = vmatpush3.bf16.msra.mxu1 %v696_v17 }
  0x3b   :  { %635 = vmatprep.subr.bf16.mxu0 %v761_v0  ;;  %655 = vmatprep.subr.bf16.mxu1 %v761_v0 }
  0x3d   :  { %612 = vmatmul.mubr.bf16.vlgmr.msra.gmra.mxu0 %v62_v15 }
  0x3e   :  { %651 = vmatprep.mubr.msk.bf16.mxu0 %vm762_vm0, %v761_v0  ;;  %636 = vmatpush3.bf16.msra.mxu0 %v697_v18 }
  0x3f   :  { %637 = vmatprep.subr.bf16.mxu0 %v761_v0 }
  0x42   :  { %638 = vmatpush3.bf16.msra.mxu0 %v698_v19 }
  0x43   :  { %639 = vmatprep.subr.bf16.mxu0 %v761_v0 }
  0x46   :  { %640 = vmatpush3.bf16.msra.mxu0 %v699_v20 }
  0x47   :  { %641 = vmatprep.subr.bf16.mxu0 %v761_v0 }
  0x4a   :  { %642 = vmatpush3.bf16.msra.mxu0 %v700_v21 }
  0x4b   :  { %643 = vmatprep.subr.bf16.mxu0 %v761_v0 }
  0x4e   :  { %644 = vmatpush3.bf16.msra.mxu0 %v701_v22 }
  0x4f   :  { %645 = vmatprep.subr.bf16.mxu0 %v761_v0 }
  0x52   :  { %646 = vmatpush3.bf16.msra.mxu0 %v702_v23 }
  0x53   :  { %647 = vmatprep.subr.bf16.mxu0 %v761_v0 }
  0x56   :  { %648 = vmatpush3.bf16.msra.mxu0 %v703_v33 }
  0x57   :  { %649 = vmatprep.subr.bf16.mxu0 %v761_v0 }
  0x5a   :  { %650 = vmatpush3.bf16.msra.mxu0 %v704_v34 }
  0xfd   :  { %v168_v25 = vpop.f32.mrf.mxu0 }
  0xfe   :  { %v169_v26 = vadd.f32 %v523_v24, %v168_v25 }
  0xff   :  { %v613_v27 = vpop.f32.mrf.mxu0 }
 0x100   :  { %v174_v28 = vpack.c.bf16 %v169_v26, %v169_v26 }
 0x101   :  { %v171_v29 = vpop.f32.mrf.mxu0 }
 0x102   :  { %v175_v30 = vmul.bf16 1045249613, %v174_v28 }
 0x103   :  { %v614_v31 = vpop.f32.mrf.mxu0 }
 0x104   :  { %v176_v32 = vmax.bf16 %v175_v30, %v174_v28 }
 0x106   :  { %632 = vmatmul.mubr.bf16.vlgmr.msra.gmra.mxu1 %v176_v32 }
 0x107   :  { %671 = vmatprep.mubr.msk.bf16.mxu1 %vm762_vm0, %v761_v0  ;;  %656 = vmatpush3.bf16.msra.mxu1 %v705_v35 }
 0x108   :  { %657 = vmatprep.subr.bf16.mxu1 %v761_v0 }
 0x10b   :  { %658 = vmatpush3.bf16.msra.mxu1 %v706_v36 }
 0x10c   :  { %659 = vmatprep.subr.bf16.mxu1 %v761_v0 }
 0x10f   :  { %660 = vmatpush3.bf16.msra.mxu1 %v707_v37 }
 0x110   :  { %661 = vmatprep.subr.bf16.mxu1 %v761_v0 }
 0x113   :  { %662 = vmatpush3.bf16.msra.mxu1 %v708_v38 }
 0x114   :  { %663 = vmatprep.subr.bf16.mxu1 %v761_v0 }
 0x117   :  { %664 = vmatpush3.bf16.msra.mxu1 %v709_v39 }
 0x118   :  { %665 = vmatprep.subr.bf16.mxu1 %v761_v0 }
 0x11b   :  { %666 = vmatpush3.bf16.msra.mxu1 %v710_v40 }
 0x11c   :  { %667 = vmatprep.subr.bf16.mxu1 %v761_v0 }
 0x11f   :  { %668 = vmatpush3.bf16.msra.mxu1 %v711_v50 }
 0x120   :  { %669 = vmatprep.subr.bf16.mxu1 %v761_v0 }
 0x123   :  { %670 = vmatpush3.bf16.msra.mxu1 %v712_v51 }
 0x1c6   :  { %v282_v42 = vpop.f32.mrf.mxu1 }
 0x1c7   :  { %v283_v43 = vadd.f32 %v532_v41, %v282_v42 }
 0x1c8   :  { %v633_v44 = vpop.f32.mrf.mxu1 }
 0x1c9   :  { %v288_v45 = vpack.c.bf16 %v283_v43, %v283_v43 }
 0x1ca   :  { %v285_v46 = vpop.f32.mrf.mxu1 }
 0x1cb   :  { %v289_v47 = vmul.bf16 1045249613, %v288_v45 }
 0x1cc   :  { %v634_v48 = vpop.f32.mrf.mxu1 }
 0x1cd   :  { %v290_v49 = vmax.bf16 %v289_v47, %v288_v45 }
 0x1cf   :  { %652 = vmatmul.mubr.bf16.vlgmr.msra.gmra.mxu0 %v290_v49 }
 0x28f   :  { %v396_v53 = vpop.f32.mrf.mxu0 }
 0x290   :  { %v397_v54 = vadd.f32 %v541_v52, %v396_v53 }
 0x291   :  { %v653_v55 = vpop.f32.mrf.mxu0 }
 0x292   :  { %v402_v56 = vpack.c.bf16 %v397_v54, %v397_v54 }
 0x293   :  { %v399_v57 = vpop.f32.mrf.mxu0 }
 0x294   :  { %v403_v58 = vmul.bf16 1045249613, %v402_v56 }
 0x295   :  { %v654_v59 = vpop.f32.mrf.mxu0 }
 0x296   :  { %v404_v60 = vmax.bf16 %v403_v58, %v402_v56 }
 0x298   :  { %672 = vmatmul.mubr.bf16.vlgmr.msra.gmra.mxu1 %v404_v60 }
 0x358   :  { %v510_v62 = vpop.f32.mrf.mxu1 }
 0x359   :  { %v511_v63 = vadd.f32 %v550_v61, %v510_v62 }
 0x35a   :  { %v673_v0 = vpop.f32.mrf.mxu1 }
 0x35b   :  { %516 = vst [vmem:[%s934_s9] sm:$0xff] %v511_v63 }
 0x35c   :  { %v513_v1 = vpop.f32.mrf.mxu1 }
 0x35e   :  { %v674_v2 = vpop.f32.mrf.mxu1 }
 0x35f   :  { %521 = vsyncpa [#allocation3], 1 }
 0x360   :  { %522 = vsyncpa [#allocation5], 1 }

// kernel: _fwd.1
= control target key start
LH: loop header
LB: loop body
LE: loop exit
PB: predicated region body
PF: predicated region fallthrough
CT: control target
= control target key end

     0   :  { %14 = vsyncpa [#allocation3], 0  ;;  %s925_s0 = inlined_call_operand.vmem [shape: bf16[8,128], index: 0, kind: input, shape index: {}]   ;;  %s926_s1 = inlined_call_operand.vmem [shape: bf16[128,128], index: 1, kind: input, shape index: {}]   ;;  %s927_s2 = inlined_call_operand.vmem [shape: f32[1,128], index: 2, kind: input, shape index: {}]   ;;  %s928_s3 = inlined_call_operand.vmem [shape: bf16[128,128], index: 3, kind: input, shape index: {}]   ;;  %s929_s4 = inlined_call_operand.vmem [shape: f32[1,128], index: 4, kind: input, shape index: {}]   ;;  %s930_s5 = inlined_call_operand.hbm [shape: bf16[128,128], index: 5, kind: input, shape index: {}]   ;;  %s931_s6 = inlined_call_operand.vmem [shape: f32[1,128], index: 6, kind: input, shape index: {}]   ;;  %s932_s7 = inlined_call_operand.hbm [shape: bf16[128,128], index: 7, kind: input, shape index: {}]   ;;  %s933_s8 = inlined_call_operand.vmem [shape: f32[1,128], index: 8, kind: input, shape index: {}]   ;;  %s934_s9 = inlined_call_operand.vmem [shape: f32[8,128], index: 9, kind: output, shape index: {}]  }
   0x1   :  { %15 = vsyncpa [#allocation5], 0  ;;  %s757_s30 = smov [#allocation2]  }
   0x2   :  { %s31_s10 = sshll.u32 %s757_s30, 4  ;;  %s32_s10 = int_to_ptr.vmem [resolvable:$true] %s31_s10 }
   0x3   :  { %s721_s11 = scalar_lea.vmem %s32_s10, 1024  ;;  %p726_p1 = scmp.lt.s32.totalorder %s32_s10, %s32_s10 }
   0x4   :  { %p722_p0 = scmp.ne.s32.totalorder %s32_s10, %s721_s11  ;;  %p727_p2 = scmp.lt.s32.totalorder %s721_s11, %s721_s11 }
   0x6   :  { %p728_p3 = por %p727_p2, %p726_p1 }
   0x8   :  { %p729_p4 = pnand %p728_p3, %p722_p0 }
   0xa   :  { %732 = shalt.err (!%p729_p4)
}
   0xb   :  { %s758_s12 = smov 64   ;;  %s759_s13 = smov 4  }
   0xc   :  { %37 = dma.hbm_to_vmem [thread:$0]  %s930_s5, 1024, %s32_s10, [#allocation3], %s758_s12, %s758_s12, %s759_s13  }
   0xd   :  { %s760_s16 = smov [#allocation4]  }
   0xe   :  { %s45_s17 = sshll.u32 %s760_s16, 4  ;;  %s46_s17 = int_to_ptr.vmem [resolvable:$true] %s45_s17 }
   0xf   :  { %s741_s18 = scalar_lea.vmem %s46_s17, 1024  ;;  %p746_p6 = scmp.lt.s32.totalorder %s46_s17, %s46_s17 }
  0x10   :  { %p742_p5 = scmp.ne.s32.totalorder %s46_s17, %s741_s18  ;;  %p747_p7 = scmp.lt.s32.totalorder %s741_s18, %s741_s18 }
  0x12   :  { %p748_p8 = por %p747_p7, %p746_p6 }
  0x14   :  { %p749_p9 = pnand %p748_p8, %p742_p5 }
  0x16   :  { %752 = shalt.err (!%p749_p9)
}
  0x17   :  { %51 = dma.hbm_to_vmem [thread:$0]  %s932_s7, 1024, %s46_s17, [#allocation5], %s758_s12, %s758_s12, %s759_s13  }
  0x18   :  { %753 = dma.done.wait [#allocation3], 1024  }
  0x19   :  { %754 = vsyncadd [#allocation3], 4294966272 }
  0x1a   :  { %755 = dma.done.wait [#allocation5], 1024  }
  0x1b   :  { %756 = vsyncadd [#allocation5], 4294966272  ;;  %v761_v0 = vmov 0.0   ;;  %vm762_vm0 = vmmov 0   ;;  %v681_v1 = vld [vmem:[%s926_s1 + $0x38] sm:$0xff]   ;;  %v682_v2 = vld [vmem:[%s926_s1 + $0x30] sm:$0xff]  }
  0x1c   :  { %595 = vmatprep.subr.bf16.mxu0 %v761_v0  ;;  %611 = vmatprep.mubr.msk.bf16.mxu0 %vm762_vm0, %v761_v0  ;;  %v683_v3 = vld [vmem:[%s926_s1 + $0x28] sm:$0xff]   ;;  %v689_v4 = vld [vmem:[%s928_s3 + $0x38] sm:$0xff]   ;;  %v684_v5 = vld [vmem:[%s926_s1 + $0x20] sm:$0xff]  }
  0x1d   :  { %615 = vmatprep.subr.bf16.mxu1 %v761_v0  ;;  %631 = vmatprep.mubr.msk.bf16.mxu1 %vm762_vm0, %v761_v0  ;;  %v690_v6 = vld [vmem:[%s928_s3 + $0x30] sm:$0xff]   ;;  %v685_v7 = vld [vmem:[%s926_s1 + $0x18] sm:$0xff]   ;;  %v691_v8 = vld [vmem:[%s928_s3 + $0x28] sm:$0xff]  }
  0x1e   :  { %596 = vmatpush3.bf16.msra.mxu0 %v681_v1  ;;  %616 = vmatpush3.bf16.msra.mxu1 %v689_v4  ;;  %v686_v9 = vld [vmem:[%s926_s1 + $0x10] sm:$0xff]   ;;  %v692_v10 = vld [vmem:[%s928_s3 + $0x20] sm:$0xff]   ;;  %v687_v11 = vld [vmem:[%s926_s1 + $0x8] sm:$0xff]  }
  0x1f   :  { %597 = vmatprep.subr.bf16.mxu0 %v761_v0  ;;  %617 = vmatprep.subr.bf16.mxu1 %v761_v0  ;;  %v693_v12 = vld [vmem:[%s928_s3 + $0x18] sm:$0xff]   ;;  %v688_v13 = vld [vmem:[%s926_s1] sm:$0xff]   ;;  %v694_v14 = vld [vmem:[%s928_s3 + $0x10] sm:$0xff]  }
  0x20   :  { %v62_v15 = vld [vmem:[%s925_s0] sm:$0xf]  ;;  %v695_v16 = vld [vmem:[%s928_s3 + $0x8] sm:$0xff]   ;;  %v697_v18 = vld [vmem:[#allocation2 + $0x38] sm:$0xff]  }
  0x21   :  { %v696_v17 = vld [vmem:[%s928_s3] sm:$0xff]   ;;  %v698_v19 = vld [vmem:[#allocation2 + $0x30] sm:$0xff]   ;;  %v699_v20 = vld [vmem:[#allocation2 + $0x28] sm:$0xff]  }
  0x22   :  { %598 = vmatpush3.bf16.msra.mxu0 %v682_v2  ;;  %618 = vmatpush3.bf16.msra.mxu1 %v690_v6  ;;  %v700_v21 = vld [vmem:[#allocation2 + $0x20] sm:$0xff]   ;;  %v701_v22 = vld [vmem:[#allocation2 + $0x18] sm:$0xff]   ;;  %v702_v23 = vld [vmem:[#allocation2 + $0x10] sm:$0xff]  }
  0x23   :  { %599 = vmatprep.subr.bf16.mxu0 %v761_v0  ;;  %619 = vmatprep.subr.bf16.mxu1 %v761_v0  ;;  %v523_v24 = vld [vmem:[%s927_s2] ss:$0 sm:$0xff]  ;;  %v703_v33 = vld [vmem:[#allocation2 + $0x8] sm:$0xff]   ;;  %v705_v35 = vld [vmem:[#allocation4 + $0x38] sm:$0xff]  }
  0x24   :  { %v704_v34 = vld [vmem:[#allocation2] sm:$0xff]   ;;  %v706_v36 = vld [vmem:[#allocation4 + $0x30] sm:$0xff]   ;;  %v707_v37 = vld [vmem:[#allocation4 + $0x28] sm:$0xff]  }
  0x25   :  { %v708_v38 = vld [vmem:[#allocation4 + $0x20] sm:$0xff]   ;;  %v709_v39 = vld [vmem:[#allocation4 + $0x18] sm:$0xff]   ;;  %v710_v40 = vld [vmem:[#allocation4 + $0x10] sm:$0xff]  }
  0x26   :  { %600 = vmatpush3.bf16.msra.mxu0 %v683_v3  ;;  %620 = vmatpush3.bf16.msra.mxu1 %v691_v8  ;;  %v532_v41 = vld [vmem:[%s929_s4] ss:$0 sm:$0xff]  ;;  %v711_v50 = vld [vmem:[#allocation4 + $0x8] sm:$0xff]  }
  0x27   :  { %601 = vmatprep.subr.bf16.mxu0 %v761_v0  ;;  %621 = vmatprep.subr.bf16.mxu1 %v761_v0  ;;  %v712_v51 = vld [vmem:[#allocation4] sm:$0xff]  }
  0x28   :  { %v541_v52 = vld [vmem:[%s931_s6] ss:$0 sm:$0xff] }
  0x29   :  { %v550_v61 = vld [vmem:[%s933_s8] ss:$0 sm:$0xff] }
  0x2a   :  { %602 = vmatpush3.bf16.msra.mxu0 %v684_v5  ;;  %622 = vmatpush3.bf16.msra.mxu1 %v692_v10 }
  0x2b   :  { %603 = vmatprep.subr.bf16.mxu0 %v761_v0  ;;  %623 = vmatprep.subr.bf16.mxu1 %v761_v0 }
  0x2e   :  { %604 = vmatpush3.bf16.msra.mxu0 %v685_v7  ;;  %624 = vmatpush3.bf16.msra.mxu1 %v693_v12 }
  0x2f   :  { %605 = vmatprep.subr.bf16.mxu0 %v761_v0  ;;  %625 = vmatprep.subr.bf16.mxu1 %v761_v0 }
  0x32   :  { %606 = vmatpush3.bf16.msra.mxu0 %v686_v9  ;;  %626 = vmatpush3.bf16.msra.mxu1 %v694_v14 }
  0x33   :  { %607 = vmatprep.subr.bf16.mxu0 %v761_v0  ;;  %627 = vmatprep.subr.bf16.mxu1 %v761_v0 }
  0x36   :  { %608 = vmatpush3.bf16.msra.mxu0 %v687_v11  ;;  %628 = vmatpush3.bf16.msra.mxu1 %v695_v16 }
  0x37   :  { %609 = vmatprep.subr.bf16.mxu0 %v761_v0  ;;  %629 = vmatprep.subr.bf16.mxu1 %v761_v0 }
  0x3a   :  { %610 = vmatpush3.bf16.msra.mxu0 %v688_v13  ;;  %630 = vmatpush3.bf16.msra.mxu1 %v696_v17 }
  0x3b   :  { %635 = vmatprep.subr.bf16.mxu0 %v761_v0  ;;  %655 = vmatprep.subr.bf16.mxu1 %v761_v0 }
  0x3d   :  { %612 = vmatmul.mubr.bf16.vlgmr.msra.gmra.mxu0 %v62_v15 }
  0x3e   :  { %651 = vmatprep.mubr.msk.bf16.mxu0 %vm762_vm0, %v761_v0  ;;  %636 = vmatpush3.bf16.msra.mxu0 %v697_v18 }
  0x3f   :  { %637 = vmatprep.subr.bf16.mxu0 %v761_v0 }
  0x42   :  { %638 = vmatpush3.bf16.msra.mxu0 %v698_v19 }
  0x43   :  { %639 = vmatprep.subr.bf16.mxu0 %v761_v0 }
  0x46   :  { %640 = vmatpush3.bf16.msra.mxu0 %v699_v20 }
  0x47   :  { %641 = vmatprep.subr.bf16.mxu0 %v761_v0 }
  0x4a   :  { %642 = vmatpush3.bf16.msra.mxu0 %v700_v21 }
  0x4b   :  { %643 = vmatprep.subr.bf16.mxu0 %v761_v0 }
  0x4e   :  { %644 = vmatpush3.bf16.msra.mxu0 %v701_v22 }
  0x4f   :  { %645 = vmatprep.subr.bf16.mxu0 %v761_v0 }
  0x52   :  { %646 = vmatpush3.bf16.msra.mxu0 %v702_v23 }
  0x53   :  { %647 = vmatprep.subr.bf16.mxu0 %v761_v0 }
  0x56   :  { %648 = vmatpush3.bf16.msra.mxu0 %v703_v33 }
  0x57   :  { %649 = vmatprep.subr.bf16.mxu0 %v761_v0 }
  0x5a   :  { %650 = vmatpush3.bf16.msra.mxu0 %v704_v34 }
  0xfd   :  { %v168_v25 = vpop.f32.mrf.mxu0 }
  0xfe   :  { %v169_v26 = vadd.f32 %v523_v24, %v168_v25 }
  0xff   :  { %v613_v27 = vpop.f32.mrf.mxu0 }
 0x100   :  { %v174_v28 = vpack.c.bf16 %v169_v26, %v169_v26 }
 0x101   :  { %v171_v29 = vpop.f32.mrf.mxu0 }
 0x102   :  { %v175_v30 = vmul.bf16 1045249613, %v174_v28 }
 0x103   :  { %v614_v31 = vpop.f32.mrf.mxu0 }
 0x104   :  { %v176_v32 = vmax.bf16 %v175_v30, %v174_v28 }
 0x106   :  { %632 = vmatmul.mubr.bf16.vlgmr.msra.gmra.mxu1 %v176_v32 }
 0x107   :  { %671 = vmatprep.mubr.msk.bf16.mxu1 %vm762_vm0, %v761_v0  ;;  %656 = vmatpush3.bf16.msra.mxu1 %v705_v35 }
 0x108   :  { %657 = vmatprep.subr.bf16.mxu1 %v761_v0 }
 0x10b   :  { %658 = vmatpush3.bf16.msra.mxu1 %v706_v36 }
 0x10c   :  { %659 = vmatprep.subr.bf16.mxu1 %v761_v0 }
 0x10f   :  { %660 = vmatpush3.bf16.msra.mxu1 %v707_v37 }
 0x110   :  { %661 = vmatprep.subr.bf16.mxu1 %v761_v0 }
 0x113   :  { %662 = vmatpush3.bf16.msra.mxu1 %v708_v38 }
 0x114   :  { %663 = vmatprep.subr.bf16.mxu1 %v761_v0 }
 0x117   :  { %664 = vmatpush3.bf16.msra.mxu1 %v709_v39 }
 0x118   :  { %665 = vmatprep.subr.bf16.mxu1 %v761_v0 }
 0x11b   :  { %666 = vmatpush3.bf16.msra.mxu1 %v710_v40 }
 0x11c   :  { %667 = vmatprep.subr.bf16.mxu1 %v761_v0 }
 0x11f   :  { %668 = vmatpush3.bf16.msra.mxu1 %v711_v50 }
 0x120   :  { %669 = vmatprep.subr.bf16.mxu1 %v761_v0 }
 0x123   :  { %670 = vmatpush3.bf16.msra.mxu1 %v712_v51 }
 0x1c6   :  { %v282_v42 = vpop.f32.mrf.mxu1 }
 0x1c7   :  { %v283_v43 = vadd.f32 %v532_v41, %v282_v42 }
 0x1c8   :  { %v633_v44 = vpop.f32.mrf.mxu1 }
 0x1c9   :  { %v288_v45 = vpack.c.bf16 %v283_v43, %v283_v43 }
 0x1ca   :  { %v285_v46 = vpop.f32.mrf.mxu1 }
 0x1cb   :  { %v289_v47 = vmul.bf16 1045249613, %v288_v45 }
 0x1cc   :  { %v634_v48 = vpop.f32.mrf.mxu1 }
 0x1cd   :  { %v290_v49 = vmax.bf16 %v289_v47, %v288_v45 }
 0x1cf   :  { %652 = vmatmul.mubr.bf16.vlgmr.msra.gmra.mxu0 %v290_v49 }
 0x28f   :  { %v396_v53 = vpop.f32.mrf.mxu0 }
 0x290   :  { %v397_v54 = vadd.f32 %v541_v52, %v396_v53 }
 0x291   :  { %v653_v55 = vpop.f32.mrf.mxu0 }
 0x292   :  { %v402_v56 = vpack.c.bf16 %v397_v54, %v397_v54 }
 0x293   :  { %v399_v57 = vpop.f32.mrf.mxu0 }
 0x294   :  { %v403_v58 = vmul.bf16 1045249613, %v402_v56 }
 0x295   :  { %v654_v59 = vpop.f32.mrf.mxu0 }
 0x296   :  { %v404_v60 = vmax.bf16 %v403_v58, %v402_v56 }
 0x298   :  { %672 = vmatmul.mubr.bf16.vlgmr.msra.gmra.mxu1 %v404_v60 }
 0x358   :  { %v510_v62 = vpop.f32.mrf.mxu1 }
 0x359   :  { %v511_v63 = vadd.f32 %v550_v61, %v510_v62 }
 0x35a   :  { %v673_v0 = vpop.f32.mrf.mxu1 }
 0x35b   :  { %516 = vst [vmem:[%s934_s9] sm:$0xff] %v511_v63 }
 0x35c   :  { %v513_v1 = vpop.f32.mrf.mxu1 }
 0x35e   :  { %v674_v2 = vpop.f32.mrf.mxu1 }
 0x35f   :  { %521 = vsyncpa [#allocation3], 1 }
 0x360   :  { %522 = vsyncpa [#allocation5], 1 }

</bundles_post_ra>
